<compile_context>
chip_gen: v6e
topology: v6e:2x2x1
jax: 0.10.0
libtpu: 0.0.40
codegen_flags: <defaults>
</compile_context>

<pallas_src>
import jax
import jax.numpy as jnp
from jax.experimental import pallas as pl
from jax.experimental.pallas import tpu as pltpu

# Small, module-consistent hyperparameters (opts dict of the PyTorch IWAE).
X_DIM = 32
H_DIM = 32
Z_DIM = 8
NUM_SAMPLES = 4
BATCH = 4

ROWS = BATCH * NUM_SAMPLES          # 16 replicated rows (multiple of 8)
BATCH_PAD = 8                       # x padded to a full sublane tile

# ---- parameter-slab row offsets (all multiples of 8, everything at lane 0) ----
ROW_EW1, ROW_EW2, ROW_EWMU, ROW_EWSTD = 0, 32, 64, 96
ROW_DW1, ROW_DW2, ROW_DWO = 128, 136, 168
ROW_EB1, ROW_EB2, ROW_EBMU, ROW_EBSTD = 200, 216, 232, 248
ROW_DB1, ROW_DB2, ROW_DBO = 264, 280, 296
P_ROWS = 312                        # multiple of 8
P_LANES = 128

# ---- lane-dense output slab layout: [recon | mu | logvar | samples] x 32 lanes ----
OUT_LANES = 128
LANE_RECON, LANE_MU, LANE_LOGVAR, LANE_SAMP = 0, 32, 64, 96


def _vmem_spec():
    # Whole array resident in VMEM, no tiling (total footprint is ~170 KiB).
    return pl.BlockSpec(memory_space=pltpu.MemorySpace.VMEM)


# ---------------------------------------------------------------------------
# Fused kernel: x -> replicate -> encoder -> (mu, std) -> samples -> decoder
# ---------------------------------------------------------------------------
def iwae_fused_kernel(x_ref, eps_ref, p_ref, out_ref):
    # ---- replicate each batch row NUM_SAMPLES times via a 0/1 repeat matmul ----
    x = x_ref[...]                                                  # (8, X)
    row = jax.lax.broadcasted_iota(jnp.int32, (ROWS, BATCH_PAD), 0)
    col = jax.lax.broadcasted_iota(jnp.int32, (ROWS, BATCH_PAD), 1)
    rep = jnp.where((row >= col * NUM_SAMPLES) &
                    (row < (col + 1) * NUM_SAMPLES),
                    1.0, 0.0).astype(jnp.float32)                   # (R, 8)
    xr = jnp.dot(rep, x, preferred_element_type=jnp.float32)        # (R, X)

    # ---- encoder trunk: tanh(Linear) -> tanh(Linear) ----
    h1 = jnp.tanh(
        jnp.dot(xr, p_ref[ROW_EW1:ROW_EW1 + X_DIM, 0:H_DIM],
                preferred_element_type=jnp.float32)
        + p_ref[ROW_EB1:ROW_EB1 + ROWS, 0:H_DIM])
    h2 = jnp.tanh(
        jnp.dot(h1, p_ref[ROW_EW2:ROW_EW2 + H_DIM, 0:H_DIM],
                preferred_element_type=jnp.float32)
        + p_ref[ROW_EB2:ROW_EB2 + ROWS, 0:H_DIM])

    # ---- heads: mu and pre-std, both landing at lane 0 (no lane extract) ----
    mu = (jnp.dot(h2, p_ref[ROW_EWMU:ROW_EWMU + H_DIM, 0:Z_DIM],
                  preferred_element_type=jnp.float32)
          + p_ref[ROW_EBMU:ROW_EBMU + ROWS, 0:Z_DIM])               # (R, Z)
    s = (jnp.dot(h2, p_ref[ROW_EWSTD:ROW_EWSTD + H_DIM, 0:Z_DIM],
                 preferred_element_type=jnp.float32)
         + p_ref[ROW_EBSTD:ROW_EBSTD + ROWS, 0:Z_DIM])              # (R, Z)
    std = jnp.exp(s)                      # issued before decoder tanh chain
    logvar = jnp.log(std * std + 1e-18)   # exact IWAE.forward formula
    samples = mu + eps_ref[...] * std     # reparameterization in VMEM

    # ---- decoder: tanh(Linear) -> tanh(Linear) -> sigmoid(Linear) ----
    d1 = jnp.tanh(
        jnp.dot(samples, p_ref[ROW_DW1:ROW_DW1 + Z_DIM, 0:H_DIM],
                preferred_element_type=jnp.float32)
        + p_ref[ROW_DB1:ROW_DB1 + ROWS, 0:H_DIM])
    d2 = jnp.tanh(
        jnp.dot(d1, p_ref[ROW_DW2:ROW_DW2 + H_DIM, 0:H_DIM],
                preferred_element_type=jnp.float32)
        + p_ref[ROW_DB2:ROW_DB2 + ROWS, 0:H_DIM])
    recon = jax.nn.sigmoid(
        jnp.dot(d2, p_ref[ROW_DWO:ROW_DWO + H_DIM, 0:X_DIM],
                preferred_element_type=jnp.float32)
        + p_ref[ROW_DBO:ROW_DBO + ROWS, 0:X_DIM])

    # ---- single lane-dense (R, 128) store: 32-lane slots, unmasked vst ----
    pad = jnp.zeros((ROWS, 32 - Z_DIM), jnp.float32)
    out_ref[...] = jnp.concatenate(
        [recon, mu, pad, logvar, pad, samples, pad], axis=-1)


# ---------------------------------------------------------------------------
# Full IWAE.forward (training mode)
# ---------------------------------------------------------------------------
def iwae_forward(x, packed_params, eps):
    x_flat = x.reshape(-1, X_DIM).astype(jnp.float32)
    n = x_flat.shape[0]
    assert n == BATCH, "kernel constants are sized for the toy BATCH"
    rows = n * NUM_SAMPLES
    # Pad x to a full 8-row sublane tile (padded rows never selected by `rep`).
    x_pad = jnp.zeros((BATCH_PAD, X_DIM), jnp.float32).at[0:n, :].set(x_flat)
    eps_flat = eps.reshape(rows, Z_DIM).astype(jnp.float32)          # (R, Z)

    out = pl.pallas_call(
        iwae_fused_kernel,
        out_shape=jax.ShapeDtypeStruct((rows, OUT_LANES), jnp.float32),
        in_specs=[_vmem_spec(), _vmem_spec(), _vmem_spec()],
        out_specs=_vmem_spec(),
    )(x_pad, eps_flat, packed_params)

    recon = out[:, LANE_RECON:LANE_RECON + X_DIM].reshape(n, NUM_SAMPLES, X_DIM)
    mu = out[:, LANE_MU:LANE_MU + Z_DIM].reshape(n, NUM_SAMPLES, Z_DIM)
    logvar = out[:, LANE_LOGVAR:LANE_LOGVAR + Z_DIM].reshape(n, NUM_SAMPLES, Z_DIM)
    samples = out[:, LANE_SAMP:LANE_SAMP + Z_DIM].reshape(n, NUM_SAMPLES, Z_DIM)
    return recon, mu, logvar, samples


# ---------------------------------------------------------------------------
# Deterministic parameter init (same shapes/math as the PyTorch module; every
# Linear stored as (in_features, out_features) so y = x @ W + b).
# ---------------------------------------------------------------------------
def init_raw_params(key):
    def lin(k, fan_in, fan_out):
        kw, kb = jax.random.split(k)
        scale = 1.0 / jnp.sqrt(jnp.float32(fan_in))
        w = jax.random.uniform(kw, (fan_in, fan_out), jnp.float32, -scale, scale)
        b = jax.random.uniform(kb, (1, fan_out), jnp.float32, -scale, scale)
        return w, b

    keys = jax.random.split(key, 7)
    raw = {}
    raw["enc_w1"], raw["enc_b1"] = lin(keys[0], X_DIM, H_DIM)
    raw["enc_w2"], raw["enc_b2"] = lin(keys[1], H_DIM, H_DIM)
    raw["enc_wmu"], raw["enc_bmu"] = lin(keys[2], H_DIM, Z_DIM)
    raw["enc_wstd"], raw["enc_bstd"] = lin(keys[3], H_DIM, Z_DIM)
    raw["dec_w1"], raw["dec_b1"] = lin(keys[4], Z_DIM, H_DIM)
    raw["dec_w2"], raw["dec_b2"] = lin(keys[5], H_DIM, H_DIM)
    raw["dec_wo"], raw["dec_bo"] = lin(keys[6], H_DIM, X_DIM)
    return raw


def pack_params(raw):
    """Pack every weight/bias into one (312, 128) f32 slab.

    Weights sit at 8-row-aligned offsets, lane 0; biases are pre-broadcast to
    ROWS sublanes so the kernel's adds are plain elementwise ops.
    """
    p = jnp.zeros((P_ROWS, P_LANES), jnp.float32)

    def put_w(p, row, arr):
        return p.at[row:row + arr.shape[0], 0:arr.shape[1]].set(arr)

    def put_b(p, row, arr):
        bb = jnp.broadcast_to(arr.reshape(1, -1), (ROWS, arr.shape[-1]))
        return p.at[row:row + ROWS, 0:arr.shape[-1]].set(bb)

    p = put_w(p, ROW_EW1, raw["enc_w1"])
    p = put_w(p, ROW_EW2, raw["enc_w2"])
    p = put_w(p, ROW_EWMU, raw["enc_wmu"])
    p = put_w(p, ROW_EWSTD, raw["enc_wstd"])
    p = put_w(p, ROW_DW1, raw["dec_w1"])
    p = put_w(p, ROW_DW2, raw["dec_w2"])
    p = put_w(p, ROW_DWO, raw["dec_wo"])
    p = put_b(p, ROW_EB1, raw["enc_b1"])
    p = put_b(p, ROW_EB2, raw["enc_b2"])
    p = put_b(p, ROW_EBMU, raw["enc_bmu"])
    p = put_b(p, ROW_EBSTD, raw["enc_bstd"])
    p = put_b(p, ROW_DB1, raw["dec_b1"])
    p = put_b(p, ROW_DB2, raw["dec_b2"])
    p = put_b(p, ROW_DBO, raw["dec_bo"])
    return p


# ---------------------------------------------------------------------------
# Pure-JAX reference (mirrors the PyTorch forward) for a correctness check.
# ---------------------------------------------------------------------------
def iwae_reference(x, raw, eps):
    hp = jax.lax.Precision.HIGHEST
    x_flat = x.reshape(-1, X_DIM).astype(jnp.float32)
    h = jnp.tanh(jnp.dot(x_flat, raw["enc_w1"], precision=hp) + raw["enc_b1"])
    h = jnp.tanh(jnp.dot(h, raw["enc_w2"], precision=hp) + raw["enc_b2"])
    mu = jnp.dot(h, raw["enc_wmu"], precision=hp) + raw["enc_bmu"]
    std = jnp.exp(jnp.dot(h, raw["enc_wstd"], precision=hp) + raw["enc_bstd"])
    n = mu.shape[0]
    mu = jnp.broadcast_to(mu[:, None, :], (n, NUM_SAMPLES, Z_DIM))
    std = jnp.broadcast_to(std[:, None, :], (n, NUM_SAMPLES, Z_DIM))
    logvar = jnp.log(std * std + 1e-18)
    samples = mu + eps * std
    z = samples.reshape(-1, Z_DIM)
    d = jnp.tanh(jnp.dot(z, raw["dec_w1"], precision=hp) + raw["dec_b1"])
    d = jnp.tanh(jnp.dot(d, raw["dec_w2"], precision=hp) + raw["dec_b2"])
    recon = jax.nn.sigmoid(jnp.dot(d, raw["dec_wo"], precision=hp) + raw["dec_bo"])
    return recon.reshape(n, NUM_SAMPLES, X_DIM), mu, logvar, samples


if __name__ == "__main__":
    root = jax.random.PRNGKey(0)
    k_params, k_x, k_eps = jax.random.split(root, 3)

    raw = init_raw_params(k_params)
    packed = pack_params(raw)
    x = jax.random.uniform(k_x, (BATCH, X_DIM), jnp.float32)
    eps = jax.random.normal(k_eps, (BATCH, NUM_SAMPLES, Z_DIM), jnp.float32)

    recon, mu, logvar, samples = jax.jit(iwae_forward)(x, packed, eps)
    jax.block_until_ready((recon, mu, logvar, samples))

    assert recon.shape == (BATCH, NUM_SAMPLES, X_DIM)
    assert mu.shape == (BATCH, NUM_SAMPLES, Z_DIM)
    assert logvar.shape == (BATCH, NUM_SAMPLES, Z_DIM)
    assert samples.shape == (BATCH, NUM_SAMPLES, Z_DIM)

    r_recon, r_mu, r_logvar, r_samples = iwae_reference(x, raw, eps)
    assert bool(jnp.allclose(recon, r_recon, atol=1e-3, rtol=1e-3))
    assert bool(jnp.allclose(mu, r_mu, atol=1e-3, rtol=1e-3))
    assert bool(jnp.allclose(logvar, r_logvar, atol=1e-3, rtol=1e-3))
    assert bool(jnp.allclose(samples, r_samples, atol=1e-3, rtol=1e-3))

    print("KERNEL_OK")
</pallas_src>

<mosaic_0001>
module attributes {stable_mosaic.version = 11 : i64} {
  func.func @iwae_fused_kernel(%arg0: memref<8x32xf32, #tpu.memory_space<vmem>>, %arg1: memref<16x8xf32, #tpu.memory_space<vmem>>, %arg2: memref<312x128xf32, #tpu.memory_space<vmem>>, %arg3: memref<16x128xf32, #tpu.memory_space<vmem>>) attributes {dimension_semantics = [], scalar_prefetch = 0 : i64, scratch_operands = 0 : i64, tpu.core_type = #tpu.core_type<tc>} {
    %c0 = arith.constant 0 : index
    %c0_0 = arith.constant 0 : index
    %0 = vector.load %arg0[%c0, %c0_0] : memref<8x32xf32, #tpu.memory_space<vmem>>, vector<8x32xf32>
    %1 = tpu.iota {dimensions = array<i32: 0>} : vector<16x8xi32>
    %2 = tpu.iota {dimensions = array<i32: 1>} : vector<16x8xi32>
    %c4_i32 = arith.constant 4 : i32
    %3 = vector.broadcast %c4_i32 : i32 to vector<16x8xi32>
    %4 = arith.muli %2, %3 : vector<16x8xi32>
    %5 = arith.cmpi sge, %1, %4 : vector<16x8xi32>
    %c1_i32 = arith.constant 1 : i32
    %6 = vector.broadcast %c1_i32 : i32 to vector<16x8xi32>
    %7 = arith.addi %2, %6 : vector<16x8xi32>
    %c4_i32_1 = arith.constant 4 : i32
    %8 = vector.broadcast %c4_i32_1 : i32 to vector<16x8xi32>
    %9 = arith.muli %7, %8 : vector<16x8xi32>
    %10 = arith.cmpi slt, %1, %9 : vector<16x8xi32>
    %11 = arith.andi %5, %10 : vector<16x8xi1>
    %cst = arith.constant 1.000000e+00 : f32
    %cst_2 = arith.constant 0.000000e+00 : f32
    %12 = vector.broadcast %cst : f32 to vector<16x8xf32>
    %13 = vector.broadcast %cst_2 : f32 to vector<16x8xf32>
    %14 = arith.select %11, %12, %13 : vector<16x8xi1>, vector<16x8xf32>
    %cst_3 = arith.constant dense<0.000000e+00> : vector<16x32xf32>
    %15 = tpu.matmul %14, %0, %cst_3 {dimension_numbers = #tpu.dot_dimension_numbers<[1], [0], [0], [1], [0, 0, 1, 1], [], []>} : vector<16x8xf32>, vector<8x32xf32>, vector<16x32xf32> -> vector<16x32xf32>
    %c0_4 = arith.constant 0 : index
    %c0_5 = arith.constant 0 : index
    %16 = vector.load %arg2[%c0_4, %c0_5] : memref<312x128xf32, #tpu.memory_space<vmem>>, vector<32x32xf32>
    %cst_6 = arith.constant dense<0.000000e+00> : vector<16x32xf32>
    %17 = tpu.matmul %15, %16, %cst_6 {dimension_numbers = #tpu.dot_dimension_numbers<[1], [0], [0], [1], [0, 0, 1, 1], [], []>} : vector<16x32xf32>, vector<32x32xf32>, vector<16x32xf32> -> vector<16x32xf32>
    %c200 = arith.constant 200 : index
    %c0_7 = arith.constant 0 : index
    %18 = vector.load %arg2[%c200, %c0_7] : memref<312x128xf32, #tpu.memory_space<vmem>>, vector<16x32xf32>
    %19 = arith.addf %17, %18 : vector<16x32xf32>
    %20 = math.tanh %19 : vector<16x32xf32>
    %c32 = arith.constant 32 : index
    %c0_8 = arith.constant 0 : index
    %21 = vector.load %arg2[%c32, %c0_8] : memref<312x128xf32, #tpu.memory_space<vmem>>, vector<32x32xf32>
    %cst_9 = arith.constant dense<0.000000e+00> : vector<16x32xf32>
    %22 = tpu.matmul %20, %21, %cst_9 {dimension_numbers = #tpu.dot_dimension_numbers<[1], [0], [0], [1], [0, 0, 1, 1], [], []>} : vector<16x32xf32>, vector<32x32xf32>, vector<16x32xf32> -> vector<16x32xf32>
    %c216 = arith.constant 216 : index
    %c0_10 = arith.constant 0 : index
    %23 = vector.load %arg2[%c216, %c0_10] : memref<312x128xf32, #tpu.memory_space<vmem>>, vector<16x32xf32>
    %24 = arith.addf %22, %23 : vector<16x32xf32>
    %25 = math.tanh %24 : vector<16x32xf32>
    %c64 = arith.constant 64 : index
    %c0_11 = arith.constant 0 : index
    %26 = vector.load %arg2[%c64, %c0_11] : memref<312x128xf32, #tpu.memory_space<vmem>>, vector<32x8xf32>
    %cst_12 = arith.constant dense<0.000000e+00> : vector<16x8xf32>
    %27 = tpu.matmul %25, %26, %cst_12 {dimension_numbers = #tpu.dot_dimension_numbers<[1], [0], [0], [1], [0, 0, 1, 1], [], []>} : vector<16x32xf32>, vector<32x8xf32>, vector<16x8xf32> -> vector<16x8xf32>
    %c232 = arith.constant 232 : index
    %c0_13 = arith.constant 0 : index
    %28 = vector.load %arg2[%c232, %c0_13] : memref<312x128xf32, #tpu.memory_space<vmem>>, vector<16x8xf32>
    %29 = arith.addf %27, %28 : vector<16x8xf32>
    %c96 = arith.constant 96 : index
    %c0_14 = arith.constant 0 : index
    %30 = vector.load %arg2[%c96, %c0_14] : memref<312x128xf32, #tpu.memory_space<vmem>>, vector<32x8xf32>
    %cst_15 = arith.constant dense<0.000000e+00> : vector<16x8xf32>
    %31 = tpu.matmul %25, %30, %cst_15 {dimension_numbers = #tpu.dot_dimension_numbers<[1], [0], [0], [1], [0, 0, 1, 1], [], []>} : vector<16x32xf32>, vector<32x8xf32>, vector<16x8xf32> -> vector<16x8xf32>
    %c248 = arith.constant 248 : index
    %c0_16 = arith.constant 0 : index
    %32 = vector.load %arg2[%c248, %c0_16] : memref<312x128xf32, #tpu.memory_space<vmem>>, vector<16x8xf32>
    %33 = arith.addf %31, %32 : vector<16x8xf32>
    %34 = math.exp %33 : vector<16x8xf32>
    %35 = arith.mulf %34, %34 : vector<16x8xf32>
    %cst_17 = arith.constant 1.000000e-18 : f32
    %36 = vector.broadcast %cst_17 : f32 to vector<16x8xf32>
    %37 = arith.addf %35, %36 : vector<16x8xf32>
    %38 = math.log %37 : vector<16x8xf32>
    %c0_18 = arith.constant 0 : index
    %c0_19 = arith.constant 0 : index
    %39 = vector.load %arg1[%c0_18, %c0_19] : memref<16x8xf32, #tpu.memory_space<vmem>>, vector<16x8xf32>
    %40 = arith.mulf %39, %34 : vector<16x8xf32>
    %41 = arith.addf %29, %40 : vector<16x8xf32>
    %c128 = arith.constant 128 : index
    %c0_20 = arith.constant 0 : index
    %42 = vector.load %arg2[%c128, %c0_20] : memref<312x128xf32, #tpu.memory_space<vmem>>, vector<8x32xf32>
    %cst_21 = arith.constant dense<0.000000e+00> : vector<16x32xf32>
    %43 = tpu.matmul %41, %42, %cst_21 {dimension_numbers = #tpu.dot_dimension_numbers<[1], [0], [0], [1], [0, 0, 1, 1], [], []>} : vector<16x8xf32>, vector<8x32xf32>, vector<16x32xf32> -> vector<16x32xf32>
    %c264 = arith.constant 264 : index
    %c0_22 = arith.constant 0 : index
    %44 = vector.load %arg2[%c264, %c0_22] : memref<312x128xf32, #tpu.memory_space<vmem>>, vector<16x32xf32>
    %45 = arith.addf %43, %44 : vector<16x32xf32>
    %46 = math.tanh %45 : vector<16x32xf32>
    %c136 = arith.constant 136 : index
    %c0_23 = arith.constant 0 : index
    %47 = vector.load %arg2[%c136, %c0_23] : memref<312x128xf32, #tpu.memory_space<vmem>>, vector<32x32xf32>
    %cst_24 = arith.constant dense<0.000000e+00> : vector<16x32xf32>
    %48 = tpu.matmul %46, %47, %cst_24 {dimension_numbers = #tpu.dot_dimension_numbers<[1], [0], [0], [1], [0, 0, 1, 1], [], []>} : vector<16x32xf32>, vector<32x32xf32>, vector<16x32xf32> -> vector<16x32xf32>
    %c280 = arith.constant 280 : index
    %c0_25 = arith.constant 0 : index
    %49 = vector.load %arg2[%c280, %c0_25] : memref<312x128xf32, #tpu.memory_space<vmem>>, vector<16x32xf32>
    %50 = arith.addf %48, %49 : vector<16x32xf32>
    %51 = math.tanh %50 : vector<16x32xf32>
    %c168 = arith.constant 168 : index
    %c0_26 = arith.constant 0 : index
    %52 = vector.load %arg2[%c168, %c0_26] : memref<312x128xf32, #tpu.memory_space<vmem>>, vector<32x32xf32>
    %cst_27 = arith.constant dense<0.000000e+00> : vector<16x32xf32>
    %53 = tpu.matmul %51, %52, %cst_27 {dimension_numbers = #tpu.dot_dimension_numbers<[1], [0], [0], [1], [0, 0, 1, 1], [], []>} : vector<16x32xf32>, vector<32x32xf32>, vector<16x32xf32> -> vector<16x32xf32>
    %c296 = arith.constant 296 : index
    %c0_28 = arith.constant 0 : index
    %54 = vector.load %arg2[%c296, %c0_28] : memref<312x128xf32, #tpu.memory_space<vmem>>, vector<16x32xf32>
    %55 = arith.addf %53, %54 : vector<16x32xf32>
    %56 = arith.negf %55 : vector<16x32xf32>
    %57 = math.exp %56 : vector<16x32xf32>
    %cst_29 = arith.constant 1.000000e+00 : f32
    %58 = vector.broadcast %cst_29 : f32 to vector<16x32xf32>
    %59 = arith.addf %58, %57 : vector<16x32xf32>
    %60 = arith.divf %58, %59 : vector<16x32xf32>
    %cst_30 = arith.constant 0.000000e+00 : f32
    %61 = vector.broadcast %cst_30 : f32 to vector<16x24xf32>
    %62 = tpu.concatenate %60, %29, %61, %38, %61, %41, %61 in 1 : vector<16x32xf32>, vector<16x8xf32>, vector<16x24xf32>, vector<16x8xf32>, vector<16x24xf32>, vector<16x8xf32>, vector<16x24xf32> -> vector<16x128xf32>
    %c0_31 = arith.constant 0 : index
    %c0_32 = arith.constant 0 : index
    %63 = vector.load %arg3[%c0_31, %c0_32] : memref<16x128xf32, #tpu.memory_space<vmem>>, vector<16x128xf32>
    tpu.vector_store %arg3[%c0_31, %c0_32], %62 {strides = array<i32>} : memref<16x128xf32, #tpu.memory_space<vmem>>, vector<16x128xf32>,
    return
  }
}

</mosaic_0001>

<bundles_post_ra>
// kernel: iwae_forward.1
= control target key start
LH: loop header
LB: loop body
LE: loop exit
PB: predicated region body
PF: predicated region fallthrough
CT: control target
= control target key end

     0   :  { %8 = vsyncpa [#allocation3], 0  ;;  %s1009_s12 = smov [#allocation2]   ;;  %s1084_s0 = inlined_call_operand.vmem [shape: f32[8,32], index: 0, kind: input, shape index: {}]   ;;  %s1085_s1 = inlined_call_operand.vmem [shape: f32[16,8], index: 1, kind: input, shape index: {}]   ;;  %s1086_s2 = inlined_call_operand.hbm [shape: f32[312,128], index: 2, kind: input, shape index: {}]   ;;  %s1087_s3 = inlined_call_operand.vmem [shape: f32[16,128], index: 3, kind: output, shape index: {}]  }
   0x1   :  { %s18_s13 = sshll.u32 %s1009_s12, 4  ;;  %s19_s13 = int_to_ptr.vmem [resolvable:$true] %s18_s13 }
   0x2   :  { %s995_s14 = scalar_lea.vmem %s19_s13, 4992  ;;  %p1000_p1 = scmp.lt.s32.totalorder %s19_s13, %s19_s13 }
   0x3   :  { %p996_p0 = scmp.ne.s32.totalorder %s19_s13, %s995_s14  ;;  %p1001_p2 = scmp.lt.s32.totalorder %s995_s14, %s995_s14 }
   0x5   :  { %p1002_p3 = por %p1001_p2, %p1000_p1 }
   0x7   :  { %p1003_p4 = pnand %p1002_p3, %p996_p0 }
   0x9   :  { %1006 = shalt.err (!%p1003_p4)
}
   0xa   :  { %s1010_s15 = smov 128   ;;  %s1011_s16 = smov 8  }
   0xb   :  { %24 = dma.hbm_to_vmem [thread:$0]  %s1086_s2, 4992, %s19_s13, [#allocation3], %s1010_s15, %s1010_s15, %s1011_s16  }
   0xc   :  { %1007 = dma.done.wait [#allocation3], 4992  }
   0xd   :  { %1008 = vsyncadd [#allocation3], 4294962304  ;;  %v29_v0 = vlaneseq  ;;  %v28_v8 = vld [vmem:[%s1084_s0] sm:$0xff]  ;;  %v130_v10 = vld [vmem:[#allocation2 + $0x18] sm:$0xff]  ;;  %vm45_vm4 = vcmask 64512   ;;  %v1012_v12 = vmov 0.0  }
   0xe   :  { %v129_v11 = vld [vmem:[#allocation2 + $0x10] sm:$0xff]  ;;  %872 = vmatprep.subr.mxu0 %v28_v8  ;;  %877 = vmatprep.subr.mxu1 %v130_v10  ;;  %v128_v15 = vld [vmem:[#allocation2 + $0x8] sm:$0xff]  ;;  %v127_v16 = vld [vmem:[#allocation2] sm:$0xff]  ;;  %vm133_vm7 = vcmask 261120   ;;  %s1013_s0 = smov 32   ;;  %s1014_s24 = smov 96  }
   0xf   :  { %v30_v1 = vshrl.u32 %v29_v0, 7  ;;  %v33_v2 = vand.u32 127, %v29_v0  ;;  %873 = vmatpush3.msra.mxu0 %v28_v8  ;;  %878 = vmatpush3.msra.mxu1 %v130_v10  ;;  %v220_v19 = vld [vmem:[#allocation2 + $0x38] sm:$0xff]  ;;  %v219_v20 = vld [vmem:[#allocation2 + $0x30] sm:$0xff]  ;;  %v218_v21 = vld [vmem:[#allocation2 + $0x28] sm:$0xff]  ;;  %vm790_vm8 = vcmask 326656  }
  0x10   :  { %879 = vmatprep.subr.mxu1 %v129_v11  ;;  %888 = vmatprep.subr.mxu0 %v220_v19  ;;  %v217_v22 = vld [vmem:[#allocation2 + $0x20] sm:$0xff]  ;;  %v132_v23 = vld [vmem:[#allocation2 + $0xd0] sm:$0xff]  ;;  %v131_v25 = vld [vmem:[#allocation2 + $0xc8] sm:$0xff]  ;;  %vm793_vm9 = vcmask 523264   ;;  %vm796_vm10 = vcmask 588800   ;;  %vm799_vm11 = vcmask 785408  }
  0x11   :  { %v31_v3 = vadd.s32 8, %v30_v1  ;;  %v34_v4 = vmul.u32 4, %v33_v2  ;;  %v37_v5 = vadd.s32 1, %v33_v2  ;;  %880 = vmatpush3.msra.mxu1 %v129_v11  ;;  %v309_v31 = vld [vmem:[#allocation2 + $0x58] sm:$0xff]  ;;  %v308_v33 = vld [vmem:[#allocation2 + $0x50] sm:$0xff]  ;;  %v307_v35 = vld [vmem:[#allocation2 + $0x48] sm:$0xff] }
  0x12   :  { %881 = vmatprep.subr.mxu1 %v128_v15  ;;  %v396_v32 = vld [vmem:[#allocation2 + $0x78] sm:$0xff]  ;;  %v395_v34 = vld [vmem:[#allocation2 + $0x70] sm:$0xff]  ;;  %v394_v36 = vld [vmem:[#allocation2 + $0x68] sm:$0xff]  ;;  %vm802_vm12 = vcmask 850944  }
  0x13   :  { %vm1039_vm0 = vcmp.ge.s32.totalorder %v30_v1, %v34_v4  ;;  %v38_v7 = vmul.u32 4, %v37_v5  ;;  %vm1046_vm1 = vcmp.ge.s32.totalorder %v31_v3, %v34_v4  ;;  %882 = vmatpush3.msra.mxu1 %v128_v15  ;;  %v306_v37 = vld [vmem:[#allocation2 + $0x40] sm:$0xff]  ;;  %v221_v41 = vld [vmem:[#allocation2 + $0xd8] sm:$0xff]  ;;  %v311_v48 = vld [vmem:[#allocation2 + $0xf0] sm:$0xff] }
  0x14   :  { %883 = vmatprep.subr.mxu1 %v127_v16  ;;  %v393_v38 = vld [vmem:[#allocation2 + $0x60] sm:$0xff]  ;;  %v397_v52 = vld [vmem:[#allocation2 + $0xf8] sm:$0xff]  ;;  %v310_v56 = vld [vmem:[#allocation2 + $0xe8] sm:$0xff] }
  0x15   :  { %vm39_vm2 = vcmp.lt.s32.totalorder %v30_v1, %v38_v7  ;;  %vm40_vm3 = vcmp.lt.s32.totalorder %v31_v3, %v38_v7  ;;  %884 = vmatpush3.msra.mxu1 %v127_v16  ;;  %v222_v39 = vld [vmem:[#allocation2 + $0xe0] sm:$0xff]  ;;  %v487_v62 = vld [vmem:[%s1085_s1 + $0x8] sm:$0xff]  ;;  %v580_v15 = vld [vmem:[#allocation2 + $0x98] sm:$0xff] }
  0x16   :  { %vm41_vm5 = vmand %vm1039_vm0, %vm39_vm2  ;;  %899 = vmatprep.subr.mxu1 %v309_v31  ;;  %v492_v47 = vld [vmem:[#allocation2 + $0x80] sm:$0xff]  ;;  %v579_v16 = vld [vmem:[#allocation2 + $0x90] sm:$0xff] }
  0x17   :  { %vm42_vm6 = vmand %vm1046_vm1, %vm40_vm3  ;;  %v43_v13 = vsel %vm41_vm5, 1.0, %v1012_v12  ;;  %v398_v49 = vld [vmem:[#allocation2 + $0x100] sm:$0xff] }
  0x18   :  { %v44_v14 = vsel %vm42_vm6, 1.0, %v1012_v12  ;;  %874 = vmatprep.mubr.msk.f32.mxu0 %vm45_vm4, %v43_v13  ;;  %v486_v0 = vld [vmem:[%s1085_s1] sm:$0xff]  ;;  %s1015_s1 = smov 64  }
  0x19   :  { %875 = vmatmul.mubr.msk.f32.vlgmr.msra.gmra.mxu0 %vm45_vm4, %v44_v14  ;;  %v581_v14 = vld [vmem:[#allocation2 + $0xa0] sm:$0xff] }
  0x1a   :  { %889 = vmatpush3.msra.mxu0 %v220_v19 }
  0x1b   :  { %890 = vmatprep.subr.mxu0 %v219_v20 }
  0x1c   :  { %891 = vmatpush3.msra.mxu0 %v219_v20  ;;  %v493_v20 = vld [vmem:[#allocation2 + $0x108] sm:$0xff] }
  0x1d   :  { %892 = vmatprep.subr.mxu0 %v218_v21 }
  0x1e   :  { %893 = vmatpush3.msra.mxu0 %v218_v21 }
  0x1f   :  { %894 = vmatprep.subr.mxu0 %v217_v22 }
  0x20   :  { %895 = vmatpush3.msra.mxu0 %v217_v22 }
  0x21   :  { %910 = vmatprep.subr.mxu0 %v396_v32 }
  0xd9   :  { %v876_v17 = vpop.f32.mrf.mxu0 }
  0xdb   :  { %v118_v18 = vpop.f32.mrf.mxu0 }
  0xdc   :  { %885 = vmatprep.mubr.msk.f32.mxu1 %vm133_vm7, %v118_v18  ;;  %v494_v18 = vld [vmem:[#allocation2 + $0x110] sm:$0xff] }
  0xdd   :  { %886 = vmatmul.mubr.msk.f32.vlgmr.msra.gmra.mxu1 %vm133_vm7, %v876_v17  ;;  %v578_v17 = vld [vmem:[#allocation2 + $0x88] sm:$0xff] }
  0xde   :  { %900 = vmatpush3.msra.mxu1 %v309_v31 }
  0xdf   :  { %901 = vmatprep.subr.mxu1 %v308_v33 }
  0xe0   :  { %902 = vmatpush3.msra.mxu1 %v308_v33 }
  0xe1   :  { %903 = vmatprep.subr.mxu1 %v307_v35 }
  0xe2   :  { %904 = vmatpush3.msra.mxu1 %v307_v35 }
  0xe3   :  { %905 = vmatprep.subr.mxu1 %v306_v37 }
  0xe4   :  { %906 = vmatpush3.msra.mxu1 %v306_v37 }
  0xe5   :  { %921 = vmatprep.subr.mxu1 %v492_v47 }
 0x19d   :  { %v887_v24 = vpop.f32.mrf.mxu1 }
 0x19e   :  { %v212_v26 = vadd.f32 %v887_v24, %v132_v23 }
 0x19f   :  { %v206_v27 = vpop.f32.mrf.mxu1 }
 0x1a0   :  { %v207_v28 = vadd.f32 %v206_v27, %v131_v25  ;;  %v669_v27 = vld [vmem:[#allocation2 + $0xb8] sm:$0xff] }
 0x1a2   :  { %955 = vtanh.f32 %v207_v28  ;;  %v668_v28 = vld [vmem:[#allocation2 + $0xb0] sm:$0xff] }
 0x1a3   :  { %957 = vtanh.f32 %v212_v26  ;;  %v670_v26 = vld [vmem:[#allocation2 + $0xc0] sm:$0xff] }
 0x1af   :  { %v956_v29 = vpop.eup %955 }
 0x1b0   :  { %v958_v30 = vpop.eup %957  ;;  %896 = vmatprep.mubr.msk.f32.mxu0 %vm133_vm7, %v956_v29  ;;  %v667_v29 = vld [vmem:[#allocation2 + $0xa8] sm:$0xff] }
 0x1b1   :  { %897 = vmatmul.mubr.msk.f32.vlgmr.msra.gmra.mxu0 %vm133_vm7, %v958_v30  ;;  %v583_v30 = vld [vmem:[#allocation2 + $0x120] sm:$0xff] }
 0x1b2   :  { %911 = vmatpush3.msra.mxu0 %v396_v32  ;;  %v582_v32 = vld [vmem:[#allocation2 + $0x118] sm:$0xff] }
 0x1b3   :  { %912 = vmatprep.subr.mxu0 %v395_v34 }
 0x1b4   :  { %913 = vmatpush3.msra.mxu0 %v395_v34 }
 0x1b5   :  { %914 = vmatprep.subr.mxu0 %v394_v36 }
 0x1b6   :  { %915 = vmatpush3.msra.mxu0 %v394_v36 }
 0x1b7   :  { %916 = vmatprep.subr.mxu0 %v393_v38 }
 0x1b8   :  { %917 = vmatpush3.msra.mxu0 %v393_v38  ;;  %v672_v38 = vld [vmem:[#allocation2 + $0x130] sm:$0xff] }
 0x1b9   :  { %926 = vmatprep.subr.mxu0 %v581_v14 }
 0x271   :  { %v898_v40 = vpop.f32.mrf.mxu0 }
 0x272   :  { %v301_v42 = vadd.f32 %v898_v40, %v222_v39  ;;  %v671_v40 = vld [vmem:[#allocation2 + $0x128] sm:$0xff] }
 0x273   :  { %v295_v43 = vpop.f32.mrf.mxu0 }
 0x274   :  { %v296_v44 = vadd.f32 %v295_v43, %v221_v41 }
 0x276   :  { %959 = vtanh.f32 %v296_v44 }
 0x277   :  { %961 = vtanh.f32 %v301_v42 }
 0x283   :  { %v960_v45 = vpop.eup %959 }
 0x284   :  { %v962_v46 = vpop.eup %961  ;;  %907 = vmatprep.mubr.msk.f32.mxu1 %vm133_vm7, %v960_v45  ;;  %918 = vmatprep.mubr.msk.f32.mxu0 %vm133_vm7, %v960_v45 }
 0x285   :  { %908 = vmatmul.mubr.msk.f32.vlgmr.msra.gmra.mxu1 %vm133_vm7, %v962_v46  ;;  %919 = vmatmul.mubr.msk.f32.vlgmr.msra.gmra.mxu0 %vm133_vm7, %v962_v46 }
 0x286   :  { %922 = vmatpush3.msra.mxu1 %v492_v47  ;;  %927 = vmatpush3.msra.mxu0 %v581_v14 }
 0x287   :  { %928 = vmatprep.subr.mxu0 %v580_v15  ;;  %937 = vmatprep.subr.mxu1 %v670_v26 }
 0x288   :  { %929 = vmatpush3.msra.mxu0 %v580_v15 }
 0x289   :  { %930 = vmatprep.subr.mxu0 %v579_v16 }
 0x28a   :  { %931 = vmatpush3.msra.mxu0 %v579_v16 }
 0x28b   :  { %932 = vmatprep.subr.mxu0 %v578_v17 }
 0x28c   :  { %933 = vmatpush3.msra.mxu0 %v578_v17 }
 0x345   :  { %v909_v50 = vpop.f32.mrf.mxu1  ;;  %v920_v51 = vpop.f32.mrf.mxu0 }
 0x346   :  { %v390_v53 = vadd.f32 %v909_v50, %v311_v48  ;;  %v471_v54 = vadd.f32 %v920_v51, %v398_v49 }
 0x347   :  { %v384_v55 = vpop.f32.mrf.mxu1  ;;  %v465_v57 = vpop.f32.mrf.mxu0 }
 0x348   :  { %v476_v58 = vmul.f32 1.442695, %v471_v54  ;;  %v466_v59 = vadd.f32 %v465_v57, %v397_v52  ;;  %770 = vrot.lane.b32.xlu0 %v390_v53, %s1013_s0  ;;  %v385_v60 = vadd.f32 %v384_v55, %v310_v56 }
 0x34a   :  { %963 = vpow2.f32 %v476_v58  ;;  %v474_v61 = vmul.f32 1.442695, %v466_v59 }
 0x34c   :  { %965 = vpow2.f32 %v474_v61  ;;  %768 = vrot.lane.b32.xlu0 %v385_v60, %s1013_s0 }
 0x357   :  { %v964_v63 = vpop.eup %963 }
 0x358   :  { %v479_v1 = vmul.f32 %v964_v63, %v964_v63  ;;  %v489_v3 = vmul.f32 %v964_v63, %v487_v62 }
 0x359   :  { %v966_v2 = vpop.eup %965 }
 0x35a   :  { %v488_v4 = vmul.f32 %v966_v2, %v486_v0  ;;  %v481_v5 = vadd.f32 1e-18, %v479_v1  ;;  %v478_v6 = vmul.f32 %v966_v2, %v966_v2  ;;  %v491_v9 = vadd.f32 %v489_v3, %v390_v53 }
 0x35c   :  { %v490_v7 = vadd.f32 %v488_v4, %v385_v60  ;;  %967 = vlog2.f32 %v481_v5  ;;  %v480_v8 = vadd.f32 1e-18, %v478_v6 }
 0x35e   :  { %782 = vrot.lane.b32.xlu0 %v490_v7, %s1014_s24  ;;  %923 = vmatprep.mubr.msk.f32.mxu1 %vm45_vm4, %v490_v7  ;;  %969 = vlog2.f32 %v480_v8 }
 0x35f   :  { %924 = vmatmul.mubr.msk.f32.vlgmr.msra.gmra.mxu1 %vm45_vm4, %v491_v9 }
 0x360   :  { %938 = vmatpush3.msra.mxu1 %v670_v26 }
 0x361   :  { %939 = vmatprep.subr.mxu1 %v669_v27 }
 0x362   :  { %940 = vmatpush3.msra.mxu1 %v669_v27 }
 0x363   :  { %941 = vmatprep.subr.mxu1 %v668_v28 }
 0x364   :  { %942 = vmatpush3.msra.mxu1 %v668_v28 }
 0x365   :  { %943 = vmatprep.subr.mxu1 %v667_v29 }
 0x366   :  { %944 = vmatpush3.msra.mxu1 %v667_v29 }
 0x369   :  { %v968_v10 = vpop.eup %967 }
 0x36a   :  { %v485_v11 = vmul.f32 0.6931472, %v968_v10 }
 0x36b   :  { %v970_v12 = vpop.eup %969 }
 0x36c   :  { %778 = vrot.lane.b32.xlu1 %v485_v11, %s1015_s1  ;;  %v483_v13 = vmul.f32 0.6931472, %v970_v12 }
 0x370   :  { %776 = vrot.lane.b32.xlu1 %v483_v13, %s1015_s1 }
 0x374   :  { %784 = vrot.lane.b32.xlu1 %v491_v9, %s1014_s24 }
 0x3ba   :  { %v771_v51 = vpop.permute.xlu0 %770 }
 0x3be   :  { %v769_v56 = vpop.permute.xlu0 %768 }
 0x3d0   :  { %v783_v1 = vpop.permute.xlu0 %782 }
 0x3de   :  { %v779_v50 = vpop.permute.xlu1 %778 }
 0x3e2   :  { %v777_v52 = vpop.permute.xlu1 %776 }
 0x3e6   :  { %v785_v60 = vpop.permute.xlu1 %784 }
 0x41f   :  { %v925_v19 = vpop.f32.mrf.mxu1 }
 0x420   :  { %v573_v21 = vadd.f32 %v925_v19, %v494_v18 }
 0x421   :  { %v567_v22 = vpop.f32.mrf.mxu1 }
 0x422   :  { %v568_v23 = vadd.f32 %v567_v22, %v493_v20 }
 0x424   :  { %971 = vtanh.f32 %v568_v23 }
 0x425   :  { %973 = vtanh.f32 %v573_v21 }
 0x431   :  { %v972_v24 = vpop.eup %971 }
 0x432   :  { %v974_v25 = vpop.eup %973  ;;  %934 = vmatprep.mubr.msk.f32.mxu0 %vm133_vm7, %v972_v24 }
 0x433   :  { %935 = vmatmul.mubr.msk.f32.vlgmr.msra.gmra.mxu0 %vm133_vm7, %v974_v25 }
 0x4f3   :  { %v936_v31 = vpop.f32.mrf.mxu0 }
 0x4f4   :  { %v662_v33 = vadd.f32 %v936_v31, %v583_v30 }
 0x4f5   :  { %v656_v34 = vpop.f32.mrf.mxu0 }
 0x4f6   :  { %v657_v35 = vadd.f32 %v656_v34, %v582_v32 }
 0x4f8   :  { %975 = vtanh.f32 %v657_v35 }
 0x4f9   :  { %977 = vtanh.f32 %v662_v33 }
 0x505   :  { %v976_v36 = vpop.eup %975 }
 0x506   :  { %v978_v37 = vpop.eup %977  ;;  %945 = vmatprep.mubr.msk.f32.mxu1 %vm133_vm7, %v976_v36 }
 0x507   :  { %946 = vmatmul.mubr.msk.f32.vlgmr.msra.gmra.mxu1 %vm133_vm7, %v978_v37 }
 0x5c7   :  { %v947_v39 = vpop.f32.mrf.mxu1 }
 0x5c8   :  { %v751_v41 = vadd.f32 %v947_v39, %v672_v38 }
 0x5c9   :  { %v745_v42 = vpop.f32.mrf.mxu1 }
 0x5ca   :  { %v829_v43 = vmul.f32 -1.442695, %v751_v41  ;;  %v746_v44 = vadd.f32 %v745_v42, %v671_v40 }
 0x5cc   :  { %979 = vpow2.f32 %v829_v43  ;;  %v828_v45 = vmul.f32 -1.442695, %v746_v44 }
 0x5ce   :  { %981 = vpow2.f32 %v828_v45 }
 0x5d9   :  { %v980_v46 = vpop.eup %979 }
 0x5da   :  { %v761_v47 = vadd.f32 1.0, %v980_v46 }
 0x5db   :  { %v982_v48 = vpop.eup %981 }
 0x5dc   :  { %983 = vrcp.f32 %v761_v47  ;;  %v760_v49 = vadd.f32 1.0, %v982_v48 }
 0x5de   :  { %985 = vrcp.f32 %v760_v49 }
 0x5e9   :  { %v984_v53 = vpop.eup %983 }
 0x5ea   :  { %v789_v54 = vsel %vm133_vm7, %v984_v53, %v771_v51 }
 0x5eb   :  { %v986_v55 = vpop.eup %985  ;;  %v792_v57 = vsel %vm790_vm8, %v789_v54, 0.0 }
 0x5ec   :  { %v795_v58 = vsel %vm793_vm9, %v792_v57, %v779_v50  ;;  %v788_v59 = vsel %vm133_vm7, %v986_v55, %v769_v56 }
 0x5ed   :  { %v798_v61 = vsel %vm796_vm10, %v795_v58, 0.0  ;;  %v791_v62 = vsel %vm790_vm8, %v788_v59, 0.0 }
 0x5ee   :  { %v801_v63 = vsel %vm799_vm11, %v798_v61, %v785_v60  ;;  %v794_v0 = vsel %vm793_vm9, %v791_v62, %v777_v52 }
 0x5ef   :  { %v804_v2 = vsel %vm802_vm12, %v801_v63, 0.0  ;;  %v797_v3 = vsel %vm796_vm10, %v794_v0, 0.0 }
 0x5f0   :  { %806 = vst [vmem:[%s1087_s3 + $0x8] sm:$0xff] %v804_v2  ;;  %v800_v4 = vsel %vm799_vm11, %v797_v3, %v783_v1 }
 0x5f1   :  { %v803_v5 = vsel %vm802_vm12, %v800_v4, 0.0 }
 0x5f2   :  { %805 = vst [vmem:[%s1087_s3] sm:$0xff] %v803_v5 }
 0x5f3   :  { %811 = vsyncpa [#allocation3], 1 }

</bundles_post_ra>
